<compile_context>
chip_gen: v7x
topology: tpu7x:2x2x1
jax: 0.10.0
libtpu: 0.0.40
codegen_flags: <defaults>
</compile_context>

<pallas_src>
import jax
import jax.numpy as jnp
from jax.experimental import pallas as pl
from jax.experimental.pallas import tpu as pltpu

NUM_PIECES = 2  # module default


def _round_up(n, m):
    return ((n + m - 1) // m) * m


def maxout_kernel(x_ref, w_ref, b_ref, o_ref):
    # x_ref: (tm, In)  w_ref: (In, P*O_pad)  b_ref: (1, P*O_pad)  o_ref: (tm, O_pad)
    out_w = o_ref.shape[-1]                              # O_pad (static)
    y = jnp.dot(x_ref[...], w_ref[...], preferred_element_type=jnp.float32)
    y = y + b_ref[...]                                   # per-piece bias BEFORE the max (f32)
    num_pieces = y.shape[-1] // out_w
    acc = y[:, :out_w]
    for p in range(1, num_pieces):                       # tiny static unroll; aligned slabs, pure VPU
        acc = jnp.maximum(acc, y[:, p * out_w:(p + 1) * out_w])
    o_ref[...] = acc.astype(o_ref.dtype)


def make_fused_params(weight, bias, num_pieces=NUM_PIECES, compute_dtype=jnp.float32):
    """One-time re-layout of the nn.Linear params.  Call at init, NOT per forward.

    weight: (O*P, In), bias: (O*P,) in PyTorch layout (row index o*P + p).
    Returns:
      w_fused: (In, P*O_pad)  with w_fused[k, p*O_pad + o] = weight[o*P + p, k]
      b_fused: (1,  P*O_pad)  with b_fused[0, p*O_pad + o] = bias[o*P + p]
      out_features: O
    O is padded to a multiple of 128 so every piece slab and the output store are
    128-lane aligned (zero pad columns are sliced off after the kernel).
    """
    op, in_features = weight.shape
    assert op % num_pieces == 0
    out_features = op // num_pieces
    o_pad = _round_up(out_features, 128)

    w = jnp.transpose(weight.reshape(out_features, num_pieces, in_features), (2, 1, 0))  # (In,P,O)
    b = jnp.transpose(bias.reshape(out_features, num_pieces), (1, 0))                    # (P,O)
    if o_pad != out_features:
        w = jnp.pad(w, ((0, 0), (0, 0), (0, o_pad - out_features)))
        b = jnp.pad(b, ((0, 0), (0, o_pad - out_features)))
    w_fused = w.reshape(in_features, num_pieces * o_pad).astype(compute_dtype)
    b_fused = b.reshape(1, num_pieces * o_pad).astype(jnp.float32)
    return w_fused, b_fused, out_features


def _choose_tiling(batch, sublane, tm_max):
    """Batch tile (tm) and number of grid steps."""
    if batch <= tm_max:
        # Small batch: one grid step, tm rounded up to the sublane granularity.
        # Splitting a tiny batch only doubles per-step overhead and under-fills
        # the MXU's M rows (pointless on single-TC v5e/v6e).
        return _round_up(max(batch, 1), sublane), 1
    # Large batch: near-tm_max tiles, balanced across steps so the batch-tail
    # pad stays below grid_m * sublane rows (no whole-tensor pad blow-up).
    grid_m = -(-batch // tm_max)
    tm = _round_up(-(-batch // grid_m), sublane)
    return tm, grid_m


def maxout_forward(x, w_fused, b_fused, out_features, *, num_pieces=NUM_PIECES, tm_max=512):
    """x: (B, In) activations.  w_fused/b_fused: precomputed by make_fused_params."""
    batch, in_features = x.shape
    po_pad = w_fused.shape[1]
    assert w_fused.shape[0] == in_features and po_pad % num_pieces == 0
    o_pad = po_pad // num_pieces

    compute_dtype = w_fused.dtype
    if x.dtype != compute_dtype:
        x = x.astype(compute_dtype)          # bf16 path: halve x DMA bytes / MXU passes
    itemsize = jnp.dtype(compute_dtype).itemsize
    sublane = 16 if itemsize == 2 else 8

    tm, grid_m = _choose_tiling(batch, sublane, tm_max)
    b_padded = grid_m * tm
    if b_padded != batch:                    # at most grid_m * sublane extra rows
        x = jnp.pad(x, ((0, b_padded - batch), (0, 0)))

    # Grid-constant weight/bias: fetched once.  When the grid actually has more
    # than one step, single-buffer them so they don't pay 2x VMEM (v7x: 64 MiB).
    const_mode = {} if grid_m == 1 else {"pipeline_mode": pl.Buffered(1)}
    w_spec = pl.BlockSpec((in_features, po_pad), lambda i: (0, 0), **const_mode)
    b_spec = pl.BlockSpec((1, po_pad), lambda i: (0, 0), **const_mode)

    # Explicit VMEM budget (v5e's default scoped limit is only 16 MiB).
    need = (2 * (tm * in_features * itemsize + tm * o_pad * 4)          # x + out, double-buffered
            + 2 * (in_features * po_pad * itemsize + po_pad * 4))       # weight + bias (upper bound)
    vmem_limit = int(min(max(4 * need, 32 * 1024 * 1024), 100 * 1024 * 1024))

    out = pl.pallas_call(
        maxout_kernel,
        out_shape=jax.ShapeDtypeStruct((b_padded, o_pad), jnp.float32),
        grid_spec=pltpu.PrefetchScalarGridSpec(
            num_scalar_prefetch=0,
            grid=(grid_m,),
            in_specs=[
                pl.BlockSpec((tm, in_features), lambda i: (i, 0)),   # full-K block: no HBM-side K pad
                w_spec,
                b_spec,
            ],
            out_specs=pl.BlockSpec((tm, o_pad), lambda i: (i, 0)),
        ),
        compiler_params=pltpu.CompilerParams(
            dimension_semantics=("parallel",),
            vmem_limit_bytes=vmem_limit),
    )(x, w_fused, b_fused)

    if b_padded != batch or o_pad != out_features:
        out = out[:batch, :out_features]
    return out


def maxout_reference(x, weight, bias, num_pieces=NUM_PIECES):
    y = x @ weight.T + bias                               # (B, O*P), PyTorch semantics
    return jnp.max(y.reshape(y.shape[0], -1, num_pieces), axis=-1)


if __name__ == "__main__":
    # Small shapes consistent with the module's forward: x is (batch, input_size).
    batch, input_size, output_size = 16, 32, 128

    key = jax.random.PRNGKey(0)
    kx, kw, kb = jax.random.split(key, 3)

    x = jax.random.normal(kx, (batch, input_size), dtype=jnp.float32)
    # Deterministic init mimicking nn.Linear's uniform(-1/sqrt(In), 1/sqrt(In)).
    bound = 1.0 / (input_size ** 0.5)
    weight = jax.random.uniform(kw, (output_size * NUM_PIECES, input_size),
                                minval=-bound, maxval=bound, dtype=jnp.float32)
    bias = jax.random.uniform(kb, (output_size * NUM_PIECES,),
                              minval=-bound, maxval=bound, dtype=jnp.float32)

    ref = maxout_reference(x, weight, bias)

    # --- f32 path; fused params precomputed ONCE (hoisted out of the call path) ---
    w_fused, b_fused, out_f = make_fused_params(weight, bias, NUM_PIECES)
    out = jax.block_until_ready(maxout_forward(x, w_fused, b_fused, out_f))
    assert out.shape == (batch, output_size)
    assert jnp.allclose(out, ref, atol=1e-5, rtol=1e-5), "mismatch vs reference (f32)"

    # --- non-multiple-of-8 batch exercises the (tiny) tail-pad path ---
    x2 = jax.random.normal(kb, (batch + 5, input_size), dtype=jnp.float32)
    out2 = jax.block_until_ready(maxout_forward(x2, w_fused, b_fused, out_f))
    assert out2.shape == (batch + 5, output_size)
    assert jnp.allclose(out2, maxout_reference(x2, weight, bias), atol=1e-5, rtol=1e-5), \
        "mismatch vs reference (tail batch)"

    # --- optional bf16 MXU path (f32 accumulate, bias add + max in f32) ---
    w_bf16, b_bf16, _ = make_fused_params(weight, bias, NUM_PIECES, compute_dtype=jnp.bfloat16)
    out_bf16 = jax.block_until_ready(maxout_forward(x, w_bf16, b_bf16, out_f))
    assert out_bf16.shape == (batch, output_size)
    assert jnp.allclose(out_bf16, ref, atol=5e-2, rtol=5e-2), "mismatch vs reference (bf16)"

    print("KERNEL_OK")
</pallas_src>

<mosaic_0001>
module attributes {stable_mosaic.version = 11 : i64} {
  func.func @maxout_kernel(%arg0: i32, %arg1: memref<16x32xf32, #tpu.memory_space<vmem>>, %arg2: memref<32x256xf32, #tpu.memory_space<vmem>>, %arg3: memref<1x256xf32, #tpu.memory_space<vmem>>, %arg4: memref<16x128xf32, #tpu.memory_space<vmem>>) attributes {dimension_semantics = [#tpu.dimension_semantics<parallel>], iteration_bounds = array<i64: 1>, scalar_prefetch = 0 : i64, scratch_operands = 0 : i64, tpu.core_type = #tpu.core_type<tc>, window_params = [{transform_indices = @transform_0, window_bounds = array<i64: 16, 32>}, {pipeline_mode = #tpu.pipeline_mode<synchronous>, transform_indices = @transform_1, window_bounds = array<i64: 32, 256>}, {pipeline_mode = #tpu.pipeline_mode<synchronous>, transform_indices = @transform_2, window_bounds = array<i64: 1, 256>}, {transform_indices = @transform_3, window_bounds = array<i64: 16, 128>}]} {
    %c0 = arith.constant 0 : index
    %c0_0 = arith.constant 0 : index
    %0 = vector.load %arg1[%c0, %c0_0] : memref<16x32xf32, #tpu.memory_space<vmem>>, vector<16x32xf32>
    %c0_1 = arith.constant 0 : index
    %c0_2 = arith.constant 0 : index
    %1 = vector.load %arg2[%c0_1, %c0_2] : memref<32x256xf32, #tpu.memory_space<vmem>>, vector<32x256xf32>
    %cst = arith.constant dense<0.000000e+00> : vector<16x256xf32>
    %2 = tpu.matmul %0, %1, %cst {dimension_numbers = #tpu.dot_dimension_numbers<[1], [0], [0], [1], [0, 0, 1, 1], [], []>} : vector<16x32xf32>, vector<32x256xf32>, vector<16x256xf32> -> vector<16x256xf32>
    %c0_3 = arith.constant 0 : index
    %c0_4 = arith.constant 0 : index
    %3 = vector.load %arg3[%c0_3, %c0_4] : memref<1x256xf32, #tpu.memory_space<vmem>>, vector<1x256xf32>
    %4 = vector.broadcast %3 : vector<1x256xf32> to vector<16x256xf32>
    %5 = arith.addf %2, %4 : vector<16x256xf32>
    %6 = vector.extract_strided_slice %5 {offsets = [0, 0], sizes = [16, 128], strides = [1, 1]} : vector<16x256xf32> to vector<16x128xf32>
    %7 = vector.extract_strided_slice %5 {offsets = [0, 128], sizes = [16, 128], strides = [1, 1]} : vector<16x256xf32> to vector<16x128xf32>
    %8 = arith.maximumf %6, %7 : vector<16x128xf32>
    %c0_5 = arith.constant 0 : index
    %c0_6 = arith.constant 0 : index
    %9 = vector.load %arg4[%c0_5, %c0_6] : memref<16x128xf32, #tpu.memory_space<vmem>>, vector<16x128xf32>
    tpu.vector_store %arg4[%c0_5, %c0_6], %8 {strides = array<i32>} : memref<16x128xf32, #tpu.memory_space<vmem>>, vector<16x128xf32>,
    return
  }
  func.func @transform_0(%arg0: i32) -> (i32, i32) {
    %c0_i32 = arith.constant 0 : i32
    %c0_i32_0 = arith.constant 0 : i32
    return %arg0, %c0_i32 : i32, i32
  }
  func.func @transform_1(%arg0: i32) -> (i32, i32) {
    %c0_i32 = arith.constant 0 : i32
    %c0_i32_0 = arith.constant 0 : i32
    %c0_i32_1 = arith.constant 0 : i32
    return %c0_i32, %c0_i32_0 : i32, i32
  }
  func.func @transform_2(%arg0: i32) -> (i32, i32) {
    %c0_i32 = arith.constant 0 : i32
    %c0_i32_0 = arith.constant 0 : i32
    %c0_i32_1 = arith.constant 0 : i32
    return %c0_i32, %c0_i32_0 : i32, i32
  }
  func.func @transform_3(%arg0: i32) -> (i32, i32) {
    %c0_i32 = arith.constant 0 : i32
    %c0_i32_0 = arith.constant 0 : i32
    return %arg0, %c0_i32 : i32, i32
  }
}

</mosaic_0001>

<bundles_post_ra>
// kernel: tpu_custom_call.1
= control target key start
LH: loop header
LB: loop body
LE: loop exit
PB: predicated region body
PF: predicated region fallthrough
CT: control target
= control target key end

     0   :  { %8 = vsyncpa [#allocation3], 0  ;;  %s338_s0 = inlined_call_operand.hbm [shape: f32[16,32], index: 0, kind: input, shape index: {}]   ;;  %s339_s1 = inlined_call_operand.hbm [shape: f32[32,256], index: 1, kind: input, shape index: {}]   ;;  %s340_s2 = inlined_call_operand.vmem [shape: f32[1,256], index: 2, kind: input, shape index: {}]   ;;  %s341_s3 = inlined_call_operand.hbm [shape: f32[16,128], index: 3, kind: output, shape index: {}]  }
   0x1   :  { %9 = vsyncpa [#allocation6], 0 }
   0x2   :  { %10 = vsyncpa [#allocation4], 0  ;;  %s265_s12 = smov [#allocation2]   ;;  %s193_s16 = scalar_lea.hbm %s338_s0, 256 }
   0x3   :  { %s16_s13 = sshll.u32 %s265_s12, 4  ;;  %p194_p0 = scmp.ne.s32.totalorder %s338_s0, %s193_s16  ;;  %s17_s13 = int_to_ptr.vmem [resolvable:$true] %s16_s13 }
   0x4   :  { %p197_p1 = scmp.lt.u32.totalorder %s193_s16, %s338_s0 }
   0x6   :  { %p199_p2 = pnand %p197_p1, %p194_p0 }
   0x8   :  { %202 = shalt.err (!%p199_p2)
}
   0x9   :  { %s203_s21 = scalar_lea.vmem %s17_s13, 256  ;;  %p208_p4 = scmp.lt.s32.totalorder %s17_s13, %s17_s13 }
   0xa   :  { %p204_p3 = scmp.ne.s32.totalorder %s17_s13, %s203_s21  ;;  %p209_p5 = scmp.lt.s32.totalorder %s203_s21, %s203_s21 }
   0xc   :  { %p210_p6 = por %p209_p5, %p208_p4 }
   0xe   :  { %p211_p7 = pnand %p210_p6, %p204_p3 }
  0x10   :  { %214 = shalt.err (!%p211_p7)
}
  0x11   :  { %s266_s22 = smov 128   ;;  %s267_s23 = smov 8  }
  0x12   :  { %22 = dma.hbm_to_vmem [thread:$0]  %s338_s0, 256, %s17_s13, [#allocation3], %s266_s22, %s266_s22, %s267_s23  }
  0x13   :  { %s268_s26 = smov [#allocation5]   ;;  %s215_s30 = scalar_lea.hbm %s339_s1, 1024 }
  0x14   :  { %s28_s27 = sshll.u32 %s268_s26, 4  ;;  %p216_p8 = scmp.ne.s32.totalorder %s339_s1, %s215_s30  ;;  %s29_s27 = int_to_ptr.vmem [resolvable:$true] %s28_s27 }
  0x15   :  { %p219_p9 = scmp.lt.u32.totalorder %s215_s30, %s339_s1 }
  0x17   :  { %p221_p10 = pnand %p219_p9, %p216_p8 }
  0x19   :  { %224 = shalt.err (!%p221_p10)
}
  0x1a   :  { %s225_s8 = scalar_lea.vmem %s29_s27, 1024  ;;  %p230_p12 = scmp.lt.s32.totalorder %s29_s27, %s29_s27 }
  0x1b   :  { %p226_p11 = scmp.ne.s32.totalorder %s29_s27, %s225_s8  ;;  %p231_p13 = scmp.lt.s32.totalorder %s225_s8, %s225_s8 }
  0x1d   :  { %p232_p0 = por %p231_p13, %p230_p12 }
  0x1f   :  { %p233_p1 = pnand %p232_p0, %p226_p11 }
  0x21   :  { %236 = shalt.err (!%p233_p1)
}
  0x22   :  { %s269_s0 = smov 256   ;;  %s270_s9 = smov 16  }
  0x23   :  { %34 = dma.hbm_to_vmem [thread:$0]  %s339_s1, 1024, %s29_s27, [#allocation6], %s269_s0, %s269_s0, %s270_s9  }
  0x24   :  { %259 = dma.done.wait [#allocation3], 256  }
  0x25   :  { %260 = vsyncadd [#allocation3], 4294967040 }
  0x26   :  { %261 = dma.done.wait [#allocation6], 1024  }
  0x27   :  { %262 = vsyncadd [#allocation6], 4294966272  ;;  %v271_v0 = vmov 0.0   ;;  %v46_v1 = vld [vmem:[#allocation5 + $0x8] sm:$0xff]  ;;  %v48_v2 = vld [vmem:[#allocation5 + $0x18] sm:$0xff]  ;;  %vm65_vm0 = vcmask 261120   ;;  %v55_v15 = vlaneseq }
  0x28   :  { %136 = vmatprep.mubr.f32.mxu0 %v271_v0  ;;  %142 = vmatprep.mubr.f32.mxu1 %v271_v0  ;;  %v45_v3 = vld [vmem:[#allocation5] sm:$0xff]  ;;  %v173_v4 = vpack.c.bf16 %v48_v2, %v46_v1  ;;  %v47_v5 = vld [vmem:[#allocation5 + $0x10] sm:$0xff]  ;;  %v50_v6 = vld [vmem:[#allocation5 + $0x28] sm:$0xff]  ;;  %s272_s13 = smov [#allocation7]  }
  0x29   :  { %v52_v7 = vld [vmem:[#allocation5 + $0x38] sm:$0xff]  ;;  %v175_v8 = vpack.c.bf16 %v47_v5, %v45_v3  ;;  %v49_v10 = vld [vmem:[#allocation5 + $0x20] sm:$0xff]  ;;  %v51_v11 = vld [vmem:[#allocation5 + $0x30] sm:$0xff]  ;;  %v56_v16 = vshrl.u32 %v55_v15, 7  ;;  %s158_s14 = sshll.u32 %s272_s13, 4  ;;  %s159_s14 = int_to_ptr.vmem [resolvable:$true] %s158_s14 }
  0x2a   :  { %v177_v9 = vpack.c.bf16 %v52_v7, %v50_v6  ;;  %174 = vmatprep.subr.bf16.mxu0 %v173_v4  ;;  %181 = vmatprep.subr.bf16.mxu1 %v173_v4  ;;  %v179_v12 = vpack.c.bf16 %v51_v11, %v49_v10  ;;  %v43_v13 = vld [vmem:[#allocation2] sm:$0xff]  ;;  %v44_v14 = vld [vmem:[#allocation2 + $0x8] sm:$0xff]  ;;  %s237_s15 = scalar_lea.vmem %s159_s14, 256  ;;  %p242_p3 = scmp.lt.s32.totalorder %s159_s14, %s159_s14 }
  0x2b   :  { %176 = vmatpush1.bf16.msra.mxu0 %v175_v8  ;;  %183 = vmatpush1.bf16.msra.mxu1 %v175_v8  ;;  %v57_v17 = vsub.s32 0, %v56_v16  ;;  %v53_v18 = vld [vmem:[%s340_s2] sm:$0x3]  ;;  %v61_v19 = vsub.s32 1, %v56_v16  ;;  %p238_p2 = scmp.ne.s32.totalorder %s159_s14, %s237_s15  ;;  %p243_p4 = scmp.lt.s32.totalorder %s237_s15, %s237_s15 }
  0x2c   :  { %178 = vmatprep.subr.bf16.mxu0 %v177_v9  ;;  %182 = vmatprep.subr.bf16.mxu1 %v177_v9 }
  0x2d   :  { %v58_v20 = vrot.slane %v53_v18, %v57_v17  ;;  %v62_v21 = vrot.slane %v53_v18, %v61_v19  ;;  %p244_p5 = por %p243_p4, %p242_p3 }
  0x2f   :  { %180 = vmatpush1.bf16.msra.mxu0 %v179_v12  ;;  %184 = vmatpush1.bf16.msra.mxu1 %v179_v12  ;;  %p245_p6 = pnand %p244_p5, %p238_p2 }
  0x32   :  { %171 = vmatmul.mubr.msk.f32.vlgmr.msra.gmra.mrb[0].mxu0 %vm65_vm0, %v43_v13  ;;  %172 = vmatmul.mubr.msk.f32.vlgmr.msra.gmra.mrb[0].mxu1 %vm65_vm0, %v44_v14 }
 0x105   :  { %v138_v22 = vpop.f32.mrb[0].mxu0  ;;  %v144_v23 = vpop.f32.mrb[0].mxu1 }
 0x106   :  { %v139_v24 = vadd.f32 %v138_v22, %v58_v20  ;;  %v145_v25 = vadd.f32 %v144_v23, %v58_v20  ;;  %v140_v26 = vpop.f32.mrb[1].mxu0  ;;  %v146_v27 = vpop.f32.mrb[1].mxu1 }
 0x107   :  { %v141_v28 = vadd.f32 %v140_v26, %v62_v21  ;;  %v147_v29 = vadd.f32 %v146_v27, %v62_v21 }
 0x109   :  { %v149_v30 = vmax.f32 %v139_v24, %v141_v28  ;;  %v150_v31 = vmax.f32 %v145_v25, %v147_v29 }
 0x10b   :  { %151 = vst [vmem:[#allocation7] sm:$0xff] %v149_v30  ;;  %152 = vst [vmem:[#allocation7 + $0x8] sm:$0xff] %v150_v31 }
 0x10c   :  { %248 = shalt.err (!%p245_p6)
}
 0x10d   :  { %s249_s17 = scalar_lea.hbm %s341_s3, 256 }
 0x10e   :  { %p250_p7 = scmp.ne.s32.totalorder %s341_s3, %s249_s17  ;;  %p253_p8 = scmp.lt.u32.totalorder %s249_s17, %s341_s3 }
 0x110   :  { %p255_p9 = pnand %p253_p8, %p250_p7 }
 0x112   :  { %258 = shalt.err (!%p255_p9)
}
 0x113   :  { %164 = dma.vmem_to_hbm [thread:$0]  %s159_s14, 256, %s341_s3, [#allocation4], %s266_s22, %s266_s22, %s267_s23  }
 0x114   :  { %263 = dma.done.wait [#allocation4], 256  }
 0x115   :  { %264 = vsyncadd [#allocation4], 4294967040 }
 0x116   :  { %168 = vsyncpa [#allocation3], 1 }
 0x117   :  { %169 = vsyncpa [#allocation6], 1 }
 0x118   :  { %170 = vsyncpa [#allocation4], 1 }

</bundles_post_ra>
